<compile_context>
chip_gen: v5e
topology: v5e:2x2
jax: 0.10.0
libtpu: 0.0.40
codegen_flags: <defaults>
</compile_context>

<pallas_src>
import functools

import jax
import jax.numpy as jnp
from jax.experimental import pallas as pl
from jax.experimental.pallas import tpu as pltpu


def _round_up(a, m):
    return (a + m - 1) // m * m


def _choose_tile_b(batch):
    """Batch tile: multiples of 8; >=2 grid steps when possible (v7x dual TC); <=256 rows."""
    bp8 = _round_up(batch, 8)
    if bp8 >= 512:
        return 256
    if bp8 >= 256:
        return 128
    if bp8 >= 16:
        return _round_up(bp8 // 2, 8)
    return bp8


def _fused_fnn_kernel(*refs, layer_dims, pads, use_layer_norm, apply_dropout,
                      drop_rate, eps):
    """Runs the whole layer stack on one (TILE_B, pads[0]) activation tile.

    refs = [x, w_0..w_{L-1}, vec_0..vec_{L-1}, (u if dropout), out]
    vec_l rows: 0 = bias, 1 = gamma, 2 = beta (rows 3..7 are sublane padding).
    """
    n_layers = len(layer_dims) - 1
    x_ref = refs[0]
    w_refs = refs[1:1 + n_layers]
    vec_refs = refs[1 + n_layers:1 + 2 * n_layers]
    u_ref = refs[1 + 2 * n_layers] if apply_dropout else None
    o_ref = refs[-1]

    h = x_ref[...]                                   # (TILE_B, pads[0]) f32
    mask_cache = {}                                  # hoisted: one iota/compare per (pad,width)

    for l in range(n_layers):                        # static unroll (small n_layers)
        d_out = layer_dims[l + 1]
        out_pad = pads[l + 1]

        # Linear: bf16 operands -> MXU-native path, f32 accumulation.
        y = jnp.dot(h.astype(jnp.bfloat16), w_refs[l][...],
                    preferred_element_type=jnp.float32)
        y = y + vec_refs[l][0:1, :]                  # bias, (1, out_pad) broadcast

        if use_layer_norm:
            # Padded lanes of y are exactly 0 -> full-width sum == sum over d_out lanes.
            inv_d = jnp.float32(1.0 / d_out)
            mean = jnp.sum(y, axis=-1, keepdims=True) * inv_d
            if d_out == out_pad:
                diff = y - mean                      # no padded lanes: skip the mask
            else:
                key = (out_pad, d_out)
                if key not in mask_cache:
                    col = jax.lax.broadcasted_iota(jnp.int32, (y.shape[0], out_pad), 1)
                    mask_cache[key] = col < d_out
                diff = jnp.where(mask_cache[key], y - mean, 0.0)
            var = jnp.sum(diff * diff, axis=-1, keepdims=True) * inv_d
            y = diff * jax.lax.rsqrt(var + jnp.float32(eps))
            y = y * vec_refs[l][1:2, :] + vec_refs[l][2:3, :]   # padded gamma/beta are 0

        if l < n_layers - 1:
            y = jnp.maximum(y, 0.0)                  # hidden layers: ReLU
        elif apply_dropout:
            # Inverted dropout on the last layer; uniforms precomputed outside the kernel.
            scale = jnp.float32(0.0 if drop_rate >= 1.0 else 1.0 / (1.0 - drop_rate))
            keep = u_ref[...] >= jnp.float32(drop_rate)
            y = jnp.where(keep, y * scale, 0.0)

        h = y

    o_ref[...] = h.astype(o_ref.dtype)


def prepare_params(params, layer_dim_array, param_dtype=jnp.bfloat16):
    """One-time padding/packing of parameters (do NOT call per forward step).

    Returns a list of (w_pad, vec_pad) per layer:
      w_pad  : (round_up(d_in,128), round_up(d_out,128)) param_dtype, zero padded
      vec_pad: (8, round_up(d_out,128)) f32; rows 0/1/2 = bias/gamma/beta, rest 0.
    Padded entries MUST stay exactly 0 (LayerNorm-over-padded-lanes invariant).
    """
    n_layers = len(layer_dim_array) - 1
    pads = tuple(_round_up(int(d), 128) for d in layer_dim_array)
    prepared = []
    for l in range(n_layers):
        d_in, d_out = int(layer_dim_array[l]), int(layer_dim_array[l + 1])
        p = params[l]
        w = jnp.zeros((pads[l], pads[l + 1]), param_dtype)
        w = w.at[:d_in, :d_out].set(p["w"].astype(param_dtype))
        vec = jnp.zeros((8, pads[l + 1]), jnp.float32)
        vec = vec.at[0, :d_out].set(p["b"].astype(jnp.float32))
        vec = vec.at[1, :d_out].set(p["gamma"].astype(jnp.float32))
        vec = vec.at[2, :d_out].set(p["beta"].astype(jnp.float32))
        prepared.append((w, vec))
    return prepared


def _vmem_limit_bytes(pads, tile_b, apply_dropout):
    n_layers = len(pads) - 1
    w_bytes = sum(pads[l] * pads[l + 1] for l in range(n_layers)) * 2      # bf16
    vec_bytes = sum(8 * pads[l + 1] for l in range(n_layers)) * 4
    io_bytes = 2 * tile_b * (pads[0] + pads[-1]) * 4                       # x + out (double buf)
    if apply_dropout:
        io_bytes += 2 * tile_b * pads[-1] * 4
    act_bytes = 4 * tile_b * max(pads) * 4                                  # live intermediates
    est = 2 * (w_bytes + vec_bytes) + io_bytes + act_bytes                  # worst case: params 2x buffered
    return int(max(32 << 20, min(est + (8 << 20), 128 << 20)))


def custom_fnn_forward(x, prepared_params, layer_dim_array, *, drop_rate=0.1,
                       use_layer_norm=True, is_training=True, dropout_key=None):
    """Mirrors CustomFNN.forward. `prepared_params` comes from prepare_params()."""
    assert len(layer_dim_array) >= 2, "need at least 2 elements in layer_dim_array"
    n_layers = len(layer_dim_array) - 1
    pads = tuple(_round_up(int(d), 128) for d in layer_dim_array)

    batch, d_in0 = x.shape
    assert d_in0 == layer_dim_array[0]

    tile_b = _choose_tile_b(batch)
    batch_p = _round_up(batch, tile_b)

    x_p = jnp.zeros((batch_p, pads[0]), jnp.float32).at[:batch, :d_in0].set(
        x.astype(jnp.float32))

    apply_dropout = (bool(is_training) and (drop_rate is not None)
                     and (float(drop_rate) > 0.0))
    drop_rate_f = float(drop_rate) if drop_rate is not None else 0.0

    args = [x_p] + [w for (w, _) in prepared_params] + [v for (_, v) in prepared_params]
    if apply_dropout:
        if dropout_key is None:
            raise ValueError("dropout_key is required when is_training=True and "
                             "drop_rate > 0 (deterministic dropout hazard).")
        # Only the last layer is dropped out -> only its padded width is needed.
        u = jax.random.uniform(dropout_key, (batch_p, pads[-1]), jnp.float32)
        args.append(u)

    kernel = functools.partial(
        _fused_fnn_kernel,
        layer_dims=tuple(int(d) for d in layer_dim_array),
        pads=pads,
        use_layer_norm=bool(use_layer_norm),
        apply_dropout=apply_dropout,
        drop_rate=drop_rate_f,
        eps=1e-5,
    )

    vmem_limit = _vmem_limit_bytes(pads, tile_b, apply_dropout)
    grid = (batch_p // tile_b,)

    def build(use_buffered_params):
        pkw = {"pipeline_mode": pl.Buffered(1)} if use_buffered_params else {}
        in_specs = [pl.BlockSpec((tile_b, pads[0]), lambda i: (i, 0))]           # x tile
        for l in range(n_layers):                                                # weights (resident)
            in_specs.append(pl.BlockSpec((pads[l], pads[l + 1]), lambda i: (0, 0), **pkw))
        for l in range(n_layers):                                                # bias/gamma/beta pack
            in_specs.append(pl.BlockSpec((8, pads[l + 1]), lambda i: (0, 0), **pkw))
        if apply_dropout:
            in_specs.append(pl.BlockSpec((tile_b, pads[-1]), lambda i: (i, 0)))  # dropout uniforms
        return pl.pallas_call(
            kernel,
            out_shape=jax.ShapeDtypeStruct((batch_p, pads[-1]), jnp.float32),
            grid=grid,
            in_specs=in_specs,
            out_specs=pl.BlockSpec((tile_b, pads[-1]), lambda i: (i, 0)),
            compiler_params=pltpu.CompilerParams(
                dimension_semantics=("parallel",),
                vmem_limit_bytes=vmem_limit,
            ),
        )

    try:
        out_p = build(True)(*args)            # single-buffered resident params
    except Exception:
        out_p = build(False)(*args)           # fallback: default (double) buffering

    return out_p[:batch, :layer_dim_array[-1]]


def _reference_forward(x, params, *, use_layer_norm=True, eps=1e-5,
                       param_dtype=jnp.bfloat16):
    """Pure-JAX reference (dropout off), matched to the kernel's bf16-in/f32-acc matmuls."""
    n = len(params)
    h = x.astype(jnp.float32)
    for i, p in enumerate(params):
        w = p["w"].astype(param_dtype).astype(jnp.float32)
        h = h.astype(param_dtype).astype(jnp.float32) @ w + p["b"].astype(jnp.float32)
        if use_layer_norm:
            mean = jnp.mean(h, axis=-1, keepdims=True)
            var = jnp.mean((h - mean) ** 2, axis=-1, keepdims=True)
            h = (h - mean) * jax.lax.rsqrt(var + eps) * p["gamma"] + p["beta"]
        if i < n - 1:
            h = jnp.maximum(h, 0.0)
    return h


def init_params(key, layer_dim_array):
    """Deterministic synthetic parameter init (matches nn.Linear/LayerNorm defaults)."""
    params = []
    for i in range(len(layer_dim_array) - 1):
        d_in, d_out = layer_dim_array[i], layer_dim_array[i + 1]
        key, kw, kb = jax.random.split(key, 3)
        bound = 1.0 / jnp.sqrt(d_in)
        params.append({
            "w": jax.random.uniform(kw, (d_in, d_out), jnp.float32, -bound, bound),
            "b": jax.random.uniform(kb, (d_out,), jnp.float32, -bound, bound),
            "gamma": jnp.ones((d_out,), jnp.float32),
            "beta": jnp.zeros((d_out,), jnp.float32),
        })
    return params


if __name__ == "__main__":
    key = jax.random.PRNGKey(0)
    kx, kp, kd = jax.random.split(key, 3)

    layer_dim_array = [16, 32, 32, 8]
    batch = 8
    drop_rate = 0.1

    x = jax.random.normal(kx, (batch, layer_dim_array[0]), jnp.float32)
    params = init_params(kp, layer_dim_array)

    # One-time parameter padding/packing (outside the per-call forward path).
    prepared = prepare_params(params, layer_dim_array)

    # Eval-mode correctness check (dropout off) against a matched-precision reference.
    out_eval = custom_fnn_forward(x, prepared, layer_dim_array, drop_rate=drop_rate,
                                  use_layer_norm=True, is_training=False)
    out_eval = jax.block_until_ready(out_eval)
    ref_eval = _reference_forward(x, params, use_layer_norm=True)
    assert out_eval.shape == (batch, layer_dim_array[-1])
    max_err = float(jnp.max(jnp.abs(out_eval - ref_eval)))
    assert max_err < 2e-3, f"mismatch vs reference: {max_err}"

    # Training-mode run (dropout on, key required). Each output element must be either 0
    # (dropped) or the eval value scaled by 1/(1-p).
    out_train = custom_fnn_forward(x, prepared, layer_dim_array, drop_rate=drop_rate,
                                   use_layer_norm=True, is_training=True,
                                   dropout_key=kd)
    out_train = jax.block_until_ready(out_train)
    assert out_train.shape == (batch, layer_dim_array[-1])
    assert bool(jnp.all(jnp.isfinite(out_train)))
    scaled = ref_eval / (1.0 - drop_rate)
    drop_err = jnp.minimum(jnp.abs(out_train), jnp.abs(out_train - scaled))
    assert float(jnp.max(drop_err)) < 2e-3, "dropout semantics mismatch"

    print("KERNEL_OK")
</pallas_src>

<mosaic_0001>
module attributes {stable_mosaic.version = 11 : i64} {
  func.func @_fused_fnn_kernel(%arg0: i32, %arg1: memref<8x128xf32, #tpu.memory_space<vmem>>, %arg2: memref<128x128xbf16, #tpu.memory_space<vmem>>, %arg3: memref<128x128xbf16, #tpu.memory_space<vmem>>, %arg4: memref<128x128xbf16, #tpu.memory_space<vmem>>, %arg5: memref<8x128xf32, #tpu.memory_space<vmem>>, %arg6: memref<8x128xf32, #tpu.memory_space<vmem>>, %arg7: memref<8x128xf32, #tpu.memory_space<vmem>>, %arg8: memref<8x128xf32, #tpu.memory_space<vmem>>) attributes {dimension_semantics = [#tpu.dimension_semantics<parallel>], iteration_bounds = array<i64: 1>, scalar_prefetch = 0 : i64, scratch_operands = 0 : i64, tpu.core_type = #tpu.core_type<tc>, window_params = [{transform_indices = @transform_0, window_bounds = array<i64: 8, 128>}, {pipeline_mode = #tpu.pipeline_mode<synchronous>, transform_indices = @transform_1, window_bounds = array<i64: 128, 128>}, {pipeline_mode = #tpu.pipeline_mode<synchronous>, transform_indices = @transform_2, window_bounds = array<i64: 128, 128>}, {pipeline_mode = #tpu.pipeline_mode<synchronous>, transform_indices = @transform_3, window_bounds = array<i64: 128, 128>}, {pipeline_mode = #tpu.pipeline_mode<synchronous>, transform_indices = @transform_4, window_bounds = array<i64: 8, 128>}, {pipeline_mode = #tpu.pipeline_mode<synchronous>, transform_indices = @transform_5, window_bounds = array<i64: 8, 128>}, {pipeline_mode = #tpu.pipeline_mode<synchronous>, transform_indices = @transform_6, window_bounds = array<i64: 8, 128>}, {transform_indices = @transform_7, window_bounds = array<i64: 8, 128>}]} {
    %c0 = arith.constant 0 : index
    %c0_0 = arith.constant 0 : index
    %0 = vector.load %arg1[%c0, %c0_0] : memref<8x128xf32, #tpu.memory_space<vmem>>, vector<8x128xf32>
    %1 = arith.truncf %0 : vector<8x128xf32> to vector<8x128xbf16>
    %c0_1 = arith.constant 0 : index
    %c0_2 = arith.constant 0 : index
    %2 = vector.load %arg2[%c0_1, %c0_2] : memref<128x128xbf16, #tpu.memory_space<vmem>>, vector<128x128xbf16>
    %cst = arith.constant dense<0.000000e+00> : vector<8x128xf32>
    %3 = tpu.matmul %1, %2, %cst {dimension_numbers = #tpu.dot_dimension_numbers<[1], [0], [0], [1], [0, 0, 1, 1], [], []>} : vector<8x128xbf16>, vector<128x128xbf16>, vector<8x128xf32> -> vector<8x128xf32>
    %c0_3 = arith.constant 0 : index
    %c0_4 = arith.constant 0 : index
    %4 = vector.load %arg5[%c0_3, %c0_4] : memref<8x128xf32, #tpu.memory_space<vmem>>, vector<1x128xf32>
    %5 = vector.broadcast %4 : vector<1x128xf32> to vector<8x128xf32>
    %6 = arith.addf %3, %5 : vector<8x128xf32>
    %cst_5 = arith.constant dense<0.000000e+00> : vector<8xf32>
    %7 = vector.multi_reduction <add>, %6, %cst_5 [1] : vector<8x128xf32> to vector<8xf32>
    %8 = vector.shape_cast %7 : vector<8xf32> to vector<8x1xf32>
    %cst_6 = arith.constant 3.125000e-02 : f32
    %9 = vector.broadcast %cst_6 : f32 to vector<8x1xf32>
    %10 = arith.mulf %8, %9 : vector<8x1xf32>
    %11 = tpu.iota {dimensions = array<i32: 1>} : vector<8x128xi32>
    %c32_i32 = arith.constant 32 : i32
    %12 = vector.broadcast %c32_i32 : i32 to vector<8x128xi32>
    %13 = arith.cmpi slt, %11, %12 : vector<8x128xi32>
    %14 = vector.broadcast %10 : vector<8x1xf32> to vector<8x128xf32>
    %15 = arith.subf %6, %14 : vector<8x128xf32>
    %cst_7 = arith.constant 0.000000e+00 : f32
    %16 = vector.broadcast %cst_7 : f32 to vector<8x128xf32>
    %17 = arith.select %13, %15, %16 : vector<8x128xi1>, vector<8x128xf32>
    %18 = arith.mulf %17, %17 : vector<8x128xf32>
    %cst_8 = arith.constant dense<0.000000e+00> : vector<8xf32>
    %19 = vector.multi_reduction <add>, %18, %cst_8 [1] : vector<8x128xf32> to vector<8xf32>
    %20 = vector.shape_cast %19 : vector<8xf32> to vector<8x1xf32>
    %cst_9 = arith.constant 3.125000e-02 : f32
    %21 = vector.broadcast %cst_9 : f32 to vector<8x1xf32>
    %22 = arith.mulf %20, %21 : vector<8x1xf32>
    %cst_10 = arith.constant 9.99999974E-6 : f32
    %23 = vector.broadcast %cst_10 : f32 to vector<8x1xf32>
    %24 = arith.addf %22, %23 : vector<8x1xf32>
    %25 = math.rsqrt %24 : vector<8x1xf32>
    %26 = vector.broadcast %25 : vector<8x1xf32> to vector<8x128xf32>
    %27 = arith.mulf %17, %26 : vector<8x128xf32>
    %c1 = arith.constant 1 : index
    %c0_11 = arith.constant 0 : index
    %28 = vector.load %arg5[%c1, %c0_11] : memref<8x128xf32, #tpu.memory_space<vmem>>, vector<1x128xf32>
    %29 = vector.broadcast %28 : vector<1x128xf32> to vector<8x128xf32>
    %30 = arith.mulf %27, %29 : vector<8x128xf32>
    %c2 = arith.constant 2 : index
    %c0_12 = arith.constant 0 : index
    %31 = vector.load %arg5[%c2, %c0_12] : memref<8x128xf32, #tpu.memory_space<vmem>>, vector<1x128xf32>
    %32 = vector.broadcast %31 : vector<1x128xf32> to vector<8x128xf32>
    %33 = arith.addf %30, %32 : vector<8x128xf32>
    %cst_13 = arith.constant 0.000000e+00 : f32
    %34 = vector.broadcast %cst_13 : f32 to vector<8x128xf32>
    %35 = arith.maximumf %33, %34 : vector<8x128xf32>
    %36 = arith.truncf %35 : vector<8x128xf32> to vector<8x128xbf16>
    %c0_14 = arith.constant 0 : index
    %c0_15 = arith.constant 0 : index
    %37 = vector.load %arg3[%c0_14, %c0_15] : memref<128x128xbf16, #tpu.memory_space<vmem>>, vector<128x128xbf16>
    %cst_16 = arith.constant dense<0.000000e+00> : vector<8x128xf32>
    %38 = tpu.matmul %36, %37, %cst_16 {dimension_numbers = #tpu.dot_dimension_numbers<[1], [0], [0], [1], [0, 0, 1, 1], [], []>} : vector<8x128xbf16>, vector<128x128xbf16>, vector<8x128xf32> -> vector<8x128xf32>
    %c0_17 = arith.constant 0 : index
    %c0_18 = arith.constant 0 : index
    %39 = vector.load %arg6[%c0_17, %c0_18] : memref<8x128xf32, #tpu.memory_space<vmem>>, vector<1x128xf32>
    %40 = vector.broadcast %39 : vector<1x128xf32> to vector<8x128xf32>
    %41 = arith.addf %38, %40 : vector<8x128xf32>
    %cst_19 = arith.constant dense<0.000000e+00> : vector<8xf32>
    %42 = vector.multi_reduction <add>, %41, %cst_19 [1] : vector<8x128xf32> to vector<8xf32>
    %43 = vector.shape_cast %42 : vector<8xf32> to vector<8x1xf32>
    %cst_20 = arith.constant 3.125000e-02 : f32
    %44 = vector.broadcast %cst_20 : f32 to vector<8x1xf32>
    %45 = arith.mulf %43, %44 : vector<8x1xf32>
    %46 = vector.broadcast %45 : vector<8x1xf32> to vector<8x128xf32>
    %47 = arith.subf %41, %46 : vector<8x128xf32>
    %cst_21 = arith.constant 0.000000e+00 : f32
    %48 = vector.broadcast %cst_21 : f32 to vector<8x128xf32>
    %49 = arith.select %13, %47, %48 : vector<8x128xi1>, vector<8x128xf32>
    %50 = arith.mulf %49, %49 : vector<8x128xf32>
    %cst_22 = arith.constant dense<0.000000e+00> : vector<8xf32>
    %51 = vector.multi_reduction <add>, %50, %cst_22 [1] : vector<8x128xf32> to vector<8xf32>
    %52 = vector.shape_cast %51 : vector<8xf32> to vector<8x1xf32>
    %cst_23 = arith.constant 3.125000e-02 : f32
    %53 = vector.broadcast %cst_23 : f32 to vector<8x1xf32>
    %54 = arith.mulf %52, %53 : vector<8x1xf32>
    %cst_24 = arith.constant 9.99999974E-6 : f32
    %55 = vector.broadcast %cst_24 : f32 to vector<8x1xf32>
    %56 = arith.addf %54, %55 : vector<8x1xf32>
    %57 = math.rsqrt %56 : vector<8x1xf32>
    %58 = vector.broadcast %57 : vector<8x1xf32> to vector<8x128xf32>
    %59 = arith.mulf %49, %58 : vector<8x128xf32>
    %c1_25 = arith.constant 1 : index
    %c0_26 = arith.constant 0 : index
    %60 = vector.load %arg6[%c1_25, %c0_26] : memref<8x128xf32, #tpu.memory_space<vmem>>, vector<1x128xf32>
    %61 = vector.broadcast %60 : vector<1x128xf32> to vector<8x128xf32>
    %62 = arith.mulf %59, %61 : vector<8x128xf32>
    %c2_27 = arith.constant 2 : index
    %c0_28 = arith.constant 0 : index
    %63 = vector.load %arg6[%c2_27, %c0_28] : memref<8x128xf32, #tpu.memory_space<vmem>>, vector<1x128xf32>
    %64 = vector.broadcast %63 : vector<1x128xf32> to vector<8x128xf32>
    %65 = arith.addf %62, %64 : vector<8x128xf32>
    %cst_29 = arith.constant 0.000000e+00 : f32
    %66 = vector.broadcast %cst_29 : f32 to vector<8x128xf32>
    %67 = arith.maximumf %65, %66 : vector<8x128xf32>
    %68 = arith.truncf %67 : vector<8x128xf32> to vector<8x128xbf16>
    %c0_30 = arith.constant 0 : index
    %c0_31 = arith.constant 0 : index
    %69 = vector.load %arg4[%c0_30, %c0_31] : memref<128x128xbf16, #tpu.memory_space<vmem>>, vector<128x128xbf16>
    %cst_32 = arith.constant dense<0.000000e+00> : vector<8x128xf32>
    %70 = tpu.matmul %68, %69, %cst_32 {dimension_numbers = #tpu.dot_dimension_numbers<[1], [0], [0], [1], [0, 0, 1, 1], [], []>} : vector<8x128xbf16>, vector<128x128xbf16>, vector<8x128xf32> -> vector<8x128xf32>
    %c0_33 = arith.constant 0 : index
    %c0_34 = arith.constant 0 : index
    %71 = vector.load %arg7[%c0_33, %c0_34] : memref<8x128xf32, #tpu.memory_space<vmem>>, vector<1x128xf32>
    %72 = vector.broadcast %71 : vector<1x128xf32> to vector<8x128xf32>
    %73 = arith.addf %70, %72 : vector<8x128xf32>
    %cst_35 = arith.constant dense<0.000000e+00> : vector<8xf32>
    %74 = vector.multi_reduction <add>, %73, %cst_35 [1] : vector<8x128xf32> to vector<8xf32>
    %75 = vector.shape_cast %74 : vector<8xf32> to vector<8x1xf32>
    %cst_36 = arith.constant 1.250000e-01 : f32
    %76 = vector.broadcast %cst_36 : f32 to vector<8x1xf32>
    %77 = arith.mulf %75, %76 : vector<8x1xf32>
    %78 = tpu.iota {dimensions = array<i32: 1>} : vector<8x128xi32>
    %c8_i32 = arith.constant 8 : i32
    %79 = vector.broadcast %c8_i32 : i32 to vector<8x128xi32>
    %80 = arith.cmpi slt, %78, %79 : vector<8x128xi32>
    %81 = vector.broadcast %77 : vector<8x1xf32> to vector<8x128xf32>
    %82 = arith.subf %73, %81 : vector<8x128xf32>
    %cst_37 = arith.constant 0.000000e+00 : f32
    %83 = vector.broadcast %cst_37 : f32 to vector<8x128xf32>
    %84 = arith.select %80, %82, %83 : vector<8x128xi1>, vector<8x128xf32>
    %85 = arith.mulf %84, %84 : vector<8x128xf32>
    %cst_38 = arith.constant dense<0.000000e+00> : vector<8xf32>
    %86 = vector.multi_reduction <add>, %85, %cst_38 [1] : vector<8x128xf32> to vector<8xf32>
    %87 = vector.shape_cast %86 : vector<8xf32> to vector<8x1xf32>
    %cst_39 = arith.constant 1.250000e-01 : f32
    %88 = vector.broadcast %cst_39 : f32 to vector<8x1xf32>
    %89 = arith.mulf %87, %88 : vector<8x1xf32>
    %cst_40 = arith.constant 9.99999974E-6 : f32
    %90 = vector.broadcast %cst_40 : f32 to vector<8x1xf32>
    %91 = arith.addf %89, %90 : vector<8x1xf32>
    %92 = math.rsqrt %91 : vector<8x1xf32>
    %93 = vector.broadcast %92 : vector<8x1xf32> to vector<8x128xf32>
    %94 = arith.mulf %84, %93 : vector<8x128xf32>
    %c1_41 = arith.constant 1 : index
    %c0_42 = arith.constant 0 : index
    %95 = vector.load %arg7[%c1_41, %c0_42] : memref<8x128xf32, #tpu.memory_space<vmem>>, vector<1x128xf32>
    %96 = vector.broadcast %95 : vector<1x128xf32> to vector<8x128xf32>
    %97 = arith.mulf %94, %96 : vector<8x128xf32>
    %c2_43 = arith.constant 2 : index
    %c0_44 = arith.constant 0 : index
    %98 = vector.load %arg7[%c2_43, %c0_44] : memref<8x128xf32, #tpu.memory_space<vmem>>, vector<1x128xf32>
    %99 = vector.broadcast %98 : vector<1x128xf32> to vector<8x128xf32>
    %100 = arith.addf %97, %99 : vector<8x128xf32>
    %c0_45 = arith.constant 0 : index
    %c0_46 = arith.constant 0 : index
    %101 = vector.load %arg8[%c0_45, %c0_46] : memref<8x128xf32, #tpu.memory_space<vmem>>, vector<8x128xf32>
    tpu.vector_store %arg8[%c0_45, %c0_46], %100 {strides = array<i32>} : memref<8x128xf32, #tpu.memory_space<vmem>>, vector<8x128xf32>,
    return
  }
  func.func @transform_0(%arg0: i32) -> (i32, i32) {
    %c0_i32 = arith.constant 0 : i32
    %c0_i32_0 = arith.constant 0 : i32
    return %arg0, %c0_i32 : i32, i32
  }
  func.func @transform_1(%arg0: i32) -> (i32, i32) {
    %c0_i32 = arith.constant 0 : i32
    %c0_i32_0 = arith.constant 0 : i32
    %c0_i32_1 = arith.constant 0 : i32
    return %c0_i32, %c0_i32_0 : i32, i32
  }
  func.func @transform_2(%arg0: i32) -> (i32, i32) {
    %c0_i32 = arith.constant 0 : i32
    %c0_i32_0 = arith.constant 0 : i32
    %c0_i32_1 = arith.constant 0 : i32
    return %c0_i32, %c0_i32_0 : i32, i32
  }
  func.func @transform_3(%arg0: i32) -> (i32, i32) {
    %c0_i32 = arith.constant 0 : i32
    %c0_i32_0 = arith.constant 0 : i32
    %c0_i32_1 = arith.constant 0 : i32
    return %c0_i32, %c0_i32_0 : i32, i32
  }
  func.func @transform_4(%arg0: i32) -> (i32, i32) {
    %c0_i32 = arith.constant 0 : i32
    %c0_i32_0 = arith.constant 0 : i32
    %c0_i32_1 = arith.constant 0 : i32
    return %c0_i32, %c0_i32_0 : i32, i32
  }
  func.func @transform_5(%arg0: i32) -> (i32, i32) {
    %c0_i32 = arith.constant 0 : i32
    %c0_i32_0 = arith.constant 0 : i32
    %c0_i32_1 = arith.constant 0 : i32
    return %c0_i32, %c0_i32_0 : i32, i32
  }
  func.func @transform_6(%arg0: i32) -> (i32, i32) {
    %c0_i32 = arith.constant 0 : i32
    %c0_i32_0 = arith.constant 0 : i32
    %c0_i32_1 = arith.constant 0 : i32
    return %c0_i32, %c0_i32_0 : i32, i32
  }
  func.func @transform_7(%arg0: i32) -> (i32, i32) {
    %c0_i32 = arith.constant 0 : i32
    %c0_i32_0 = arith.constant 0 : i32
    return %arg0, %c0_i32 : i32, i32
  }
}

module attributes {stable_mosaic.version = 11 : i64} {
  func.func @_fused_fnn_kernel(%arg0: i32, %arg1: memref<8x128xf32, #tpu.memory_space<vmem>>, %arg2: memref<128x128xbf16, #tpu.memory_space<vmem>>, %arg3: memref<128x128xbf16, #tpu.memory_space<vmem>>, %arg4: memref<128x128xbf16, #tpu.memory_space<vmem>>, %arg5: memref<8x128xf32, #tpu.memory_space<vmem>>, %arg6: memref<8x128xf32, #tpu.memory_space<vmem>>, %arg7: memref<8x128xf32, #tpu.memory_space<vmem>>, %arg8: memref<8x128xf32, #tpu.memory_space<vmem>>) attributes {dimension_semantics = [#tpu.dimension_semantics<parallel>], iteration_bounds = array<i64: 1>, scalar_prefetch = 0 : i64, scratch_operands = 0 : i64, tpu.core_type = #tpu.core_type<tc>, window_params = [{transform_indices = @transform_0, window_bounds = array<i64: 8, 128>}, {pipeline_mode = #tpu.pipeline_mode<synchronous>, transform_indices = @transform_1, window_bounds = array<i64: 128, 128>}, {pipeline_mode = #tpu.pipeline_mode<synchronous>, transform_indices = @transform_2, window_bounds = array<i64: 128, 128>}, {pipeline_mode = #tpu.pipeline_mode<synchronous>, transform_indices = @transform_3, window_bounds = array<i64: 128, 128>}, {pipeline_mode = #tpu.pipeline_mode<synchronous>, transform_indices = @transform_4, window_bounds = array<i64: 8, 128>}, {pipeline_mode = #tpu.pipeline_mode<synchronous>, transform_indices = @transform_5, window_bounds = array<i64: 8, 128>}, {pipeline_mode = #tpu.pipeline_mode<synchronous>, transform_indices = @transform_6, window_bounds = array<i64: 8, 128>}, {transform_indices = @transform_7, window_bounds = array<i64: 8, 128>}]} {
    %c0 = arith.constant 0 : index
    %c0_0 = arith.constant 0 : index
    %0 = vector.load %arg1[%c0, %c0_0] : memref<8x128xf32, #tpu.memory_space<vmem>>, vector<8x128xf32>
    %1 = arith.truncf %0 : vector<8x128xf32> to vector<8x128xbf16>
    %c0_1 = arith.constant 0 : index
    %c0_2 = arith.constant 0 : index
    %2 = vector.load %arg2[%c0_1, %c0_2] : memref<128x128xbf16, #tpu.memory_space<vmem>>, vector<128x128xbf16>
    %cst = arith.constant dense<0.000000e+00> : vector<8x128xf32>
    %3 = tpu.matmul %1, %2, %cst {dimension_numbers = #tpu.dot_dimension_numbers<[1], [0], [0], [1], [0, 0, 1, 1], [], []>} : vector<8x128xbf16>, vector<128x128xbf16>, vector<8x128xf32> -> vector<8x128xf32>
    %c0_3 = arith.constant 0 : index
    %c0_4 = arith.constant 0 : index
    %4 = vector.load %arg5[%c0_3, %c0_4] : memref<8x128xf32, #tpu.memory_space<vmem>>, vector<1x128xf32>
    %5 = vector.broadcast %4 : vector<1x128xf32> to vector<8x128xf32>
    %6 = arith.addf %3, %5 : vector<8x128xf32>
    %cst_5 = arith.constant dense<0.000000e+00> : vector<8xf32>
    %7 = vector.multi_reduction <add>, %6, %cst_5 [1] : vector<8x128xf32> to vector<8xf32>
    %8 = vector.shape_cast %7 : vector<8xf32> to vector<8x1xf32>
    %cst_6 = arith.constant 3.125000e-02 : f32
    %9 = vector.broadcast %cst_6 : f32 to vector<8x1xf32>
    %10 = arith.mulf %8, %9 : vector<8x1xf32>
    %11 = tpu.iota {dimensions = array<i32: 1>} : vector<8x128xi32>
    %c32_i32 = arith.constant 32 : i32
    %12 = vector.broadcast %c32_i32 : i32 to vector<8x128xi32>
    %13 = arith.cmpi slt, %11, %12 : vector<8x128xi32>
    %14 = vector.broadcast %10 : vector<8x1xf32> to vector<8x128xf32>
    %15 = arith.subf %6, %14 : vector<8x128xf32>
    %cst_7 = arith.constant 0.000000e+00 : f32
    %16 = vector.broadcast %cst_7 : f32 to vector<8x128xf32>
    %17 = arith.select %13, %15, %16 : vector<8x128xi1>, vector<8x128xf32>
    %18 = arith.mulf %17, %17 : vector<8x128xf32>
    %cst_8 = arith.constant dense<0.000000e+00> : vector<8xf32>
    %19 = vector.multi_reduction <add>, %18, %cst_8 [1] : vector<8x128xf32> to vector<8xf32>
    %20 = vector.shape_cast %19 : vector<8xf32> to vector<8x1xf32>
    %cst_9 = arith.constant 3.125000e-02 : f32
    %21 = vector.broadcast %cst_9 : f32 to vector<8x1xf32>
    %22 = arith.mulf %20, %21 : vector<8x1xf32>
    %cst_10 = arith.constant 9.99999974E-6 : f32
    %23 = vector.broadcast %cst_10 : f32 to vector<8x1xf32>
    %24 = arith.addf %22, %23 : vector<8x1xf32>
    %25 = math.rsqrt %24 : vector<8x1xf32>
    %26 = vector.broadcast %25 : vector<8x1xf32> to vector<8x128xf32>
    %27 = arith.mulf %17, %26 : vector<8x128xf32>
    %c1 = arith.constant 1 : index
    %c0_11 = arith.constant 0 : index
    %28 = vector.load %arg5[%c1, %c0_11] : memref<8x128xf32, #tpu.memory_space<vmem>>, vector<1x128xf32>
    %29 = vector.broadcast %28 : vector<1x128xf32> to vector<8x128xf32>
    %30 = arith.mulf %27, %29 : vector<8x128xf32>
    %c2 = arith.constant 2 : index
    %c0_12 = arith.constant 0 : index
    %31 = vector.load %arg5[%c2, %c0_12] : memref<8x128xf32, #tpu.memory_space<vmem>>, vector<1x128xf32>
    %32 = vector.broadcast %31 : vector<1x128xf32> to vector<8x128xf32>
    %33 = arith.addf %30, %32 : vector<8x128xf32>
    %cst_13 = arith.constant 0.000000e+00 : f32
    %34 = vector.broadcast %cst_13 : f32 to vector<8x128xf32>
    %35 = arith.maximumf %33, %34 : vector<8x128xf32>
    %36 = arith.truncf %35 : vector<8x128xf32> to vector<8x128xbf16>
    %c0_14 = arith.constant 0 : index
    %c0_15 = arith.constant 0 : index
    %37 = vector.load %arg3[%c0_14, %c0_15] : memref<128x128xbf16, #tpu.memory_space<vmem>>, vector<128x128xbf16>
    %cst_16 = arith.constant dense<0.000000e+00> : vector<8x128xf32>
    %38 = tpu.matmul %36, %37, %cst_16 {dimension_numbers = #tpu.dot_dimension_numbers<[1], [0], [0], [1], [0, 0, 1, 1], [], []>} : vector<8x128xbf16>, vector<128x128xbf16>, vector<8x128xf32> -> vector<8x128xf32>
    %c0_17 = arith.constant 0 : index
    %c0_18 = arith.constant 0 : index
    %39 = vector.load %arg6[%c0_17, %c0_18] : memref<8x128xf32, #tpu.memory_space<vmem>>, vector<1x128xf32>
    %40 = vector.broadcast %39 : vector<1x128xf32> to vector<8x128xf32>
    %41 = arith.addf %38, %40 : vector<8x128xf32>
    %cst_19 = arith.constant dense<0.000000e+00> : vector<8xf32>
    %42 = vector.multi_reduction <add>, %41, %cst_19 [1] : vector<8x128xf32> to vector<8xf32>
    %43 = vector.shape_cast %42 : vector<8xf32> to vector<8x1xf32>
    %cst_20 = arith.constant 3.125000e-02 : f32
    %44 = vector.broadcast %cst_20 : f32 to vector<8x1xf32>
    %45 = arith.mulf %43, %44 : vector<8x1xf32>
    %46 = vector.broadcast %45 : vector<8x1xf32> to vector<8x128xf32>
    %47 = arith.subf %41, %46 : vector<8x128xf32>
    %cst_21 = arith.constant 0.000000e+00 : f32
    %48 = vector.broadcast %cst_21 : f32 to vector<8x128xf32>
    %49 = arith.select %13, %47, %48 : vector<8x128xi1>, vector<8x128xf32>
    %50 = arith.mulf %49, %49 : vector<8x128xf32>
    %cst_22 = arith.constant dense<0.000000e+00> : vector<8xf32>
    %51 = vector.multi_reduction <add>, %50, %cst_22 [1] : vector<8x128xf32> to vector<8xf32>
    %52 = vector.shape_cast %51 : vector<8xf32> to vector<8x1xf32>
    %cst_23 = arith.constant 3.125000e-02 : f32
    %53 = vector.broadcast %cst_23 : f32 to vector<8x1xf32>
    %54 = arith.mulf %52, %53 : vector<8x1xf32>
    %cst_24 = arith.constant 9.99999974E-6 : f32
    %55 = vector.broadcast %cst_24 : f32 to vector<8x1xf32>
    %56 = arith.addf %54, %55 : vector<8x1xf32>
    %57 = math.rsqrt %56 : vector<8x1xf32>
    %58 = vector.broadcast %57 : vector<8x1xf32> to vector<8x128xf32>
    %59 = arith.mulf %49, %58 : vector<8x128xf32>
    %c1_25 = arith.constant 1 : index
    %c0_26 = arith.constant 0 : index
    %60 = vector.load %arg6[%c1_25, %c0_26] : memref<8x128xf32, #tpu.memory_space<vmem>>, vector<1x128xf32>
    %61 = vector.broadcast %60 : vector<1x128xf32> to vector<8x128xf32>
    %62 = arith.mulf %59, %61 : vector<8x128xf32>
    %c2_27 = arith.constant 2 : index
    %c0_28 = arith.constant 0 : index
    %63 = vector.load %arg6[%c2_27, %c0_28] : memref<8x128xf32, #tpu.memory_space<vmem>>, vector<1x128xf32>
    %64 = vector.broadcast %63 : vector<1x128xf32> to vector<8x128xf32>
    %65 = arith.addf %62, %64 : vector<8x128xf32>
    %cst_29 = arith.constant 0.000000e+00 : f32
    %66 = vector.broadcast %cst_29 : f32 to vector<8x128xf32>
    %67 = arith.maximumf %65, %66 : vector<8x128xf32>
    %68 = arith.truncf %67 : vector<8x128xf32> to vector<8x128xbf16>
    %c0_30 = arith.constant 0 : index
    %c0_31 = arith.constant 0 : index
    %69 = vector.load %arg4[%c0_30, %c0_31] : memref<128x128xbf16, #tpu.memory_space<vmem>>, vector<128x128xbf16>
    %cst_32 = arith.constant dense<0.000000e+00> : vector<8x128xf32>
    %70 = tpu.matmul %68, %69, %cst_32 {dimension_numbers = #tpu.dot_dimension_numbers<[1], [0], [0], [1], [0, 0, 1, 1], [], []>} : vector<8x128xbf16>, vector<128x128xbf16>, vector<8x128xf32> -> vector<8x128xf32>
    %c0_33 = arith.constant 0 : index
    %c0_34 = arith.constant 0 : index
    %71 = vector.load %arg7[%c0_33, %c0_34] : memref<8x128xf32, #tpu.memory_space<vmem>>, vector<1x128xf32>
    %72 = vector.broadcast %71 : vector<1x128xf32> to vector<8x128xf32>
    %73 = arith.addf %70, %72 : vector<8x128xf32>
    %cst_35 = arith.constant dense<0.000000e+00> : vector<8xf32>
    %74 = vector.multi_reduction <add>, %73, %cst_35 [1] : vector<8x128xf32> to vector<8xf32>
    %75 = vector.shape_cast %74 : vector<8xf32> to vector<8x1xf32>
    %cst_36 = arith.constant 1.250000e-01 : f32
    %76 = vector.broadcast %cst_36 : f32 to vector<8x1xf32>
    %77 = arith.mulf %75, %76 : vector<8x1xf32>
    %78 = tpu.iota {dimensions = array<i32: 1>} : vector<8x128xi32>
    %c8_i32 = arith.constant 8 : i32
    %79 = vector.broadcast %c8_i32 : i32 to vector<8x128xi32>
    %80 = arith.cmpi slt, %78, %79 : vector<8x128xi32>
    %81 = vector.broadcast %77 : vector<8x1xf32> to vector<8x128xf32>
    %82 = arith.subf %73, %81 : vector<8x128xf32>
    %cst_37 = arith.constant 0.000000e+00 : f32
    %83 = vector.broadcast %cst_37 : f32 to vector<8x128xf32>
    %84 = arith.select %80, %82, %83 : vector<8x128xi1>, vector<8x128xf32>
    %85 = arith.mulf %84, %84 : vector<8x128xf32>
    %cst_38 = arith.constant dense<0.000000e+00> : vector<8xf32>
    %86 = vector.multi_reduction <add>, %85, %cst_38 [1] : vector<8x128xf32> to vector<8xf32>
    %87 = vector.shape_cast %86 : vector<8xf32> to vector<8x1xf32>
    %cst_39 = arith.constant 1.250000e-01 : f32
    %88 = vector.broadcast %cst_39 : f32 to vector<8x1xf32>
    %89 = arith.mulf %87, %88 : vector<8x1xf32>
    %cst_40 = arith.constant 9.99999974E-6 : f32
    %90 = vector.broadcast %cst_40 : f32 to vector<8x1xf32>
    %91 = arith.addf %89, %90 : vector<8x1xf32>
    %92 = math.rsqrt %91 : vector<8x1xf32>
    %93 = vector.broadcast %92 : vector<8x1xf32> to vector<8x128xf32>
    %94 = arith.mulf %84, %93 : vector<8x128xf32>
    %c1_41 = arith.constant 1 : index
    %c0_42 = arith.constant 0 : index
    %95 = vector.load %arg7[%c1_41, %c0_42] : memref<8x128xf32, #tpu.memory_space<vmem>>, vector<1x128xf32>
    %96 = vector.broadcast %95 : vector<1x128xf32> to vector<8x128xf32>
    %97 = arith.mulf %94, %96 : vector<8x128xf32>
    %c2_43 = arith.constant 2 : index
    %c0_44 = arith.constant 0 : index
    %98 = vector.load %arg7[%c2_43, %c0_44] : memref<8x128xf32, #tpu.memory_space<vmem>>, vector<1x128xf32>
    %99 = vector.broadcast %98 : vector<1x128xf32> to vector<8x128xf32>
    %100 = arith.addf %97, %99 : vector<8x128xf32>
    %c0_45 = arith.constant 0 : index
    %c0_46 = arith.constant 0 : index
    %101 = vector.load %arg8[%c0_45, %c0_46] : memref<8x128xf32, #tpu.memory_space<vmem>>, vector<8x128xf32>
    tpu.vector_store %arg8[%c0_45, %c0_46], %100 {strides = array<i32>} : memref<8x128xf32, #tpu.memory_space<vmem>>, vector<8x128xf32>,
    return
  }
  func.func @transform_0(%arg0: i32) -> (i32, i32) {
    %c0_i32 = arith.constant 0 : i32
    %c0_i32_0 = arith.constant 0 : i32
    return %arg0, %c0_i32 : i32, i32
  }
  func.func @transform_1(%arg0: i32) -> (i32, i32) {
    %c0_i32 = arith.constant 0 : i32
    %c0_i32_0 = arith.constant 0 : i32
    %c0_i32_1 = arith.constant 0 : i32
    return %c0_i32, %c0_i32_0 : i32, i32
  }
  func.func @transform_2(%arg0: i32) -> (i32, i32) {
    %c0_i32 = arith.constant 0 : i32
    %c0_i32_0 = arith.constant 0 : i32
    %c0_i32_1 = arith.constant 0 : i32
    return %c0_i32, %c0_i32_0 : i32, i32
  }
  func.func @transform_3(%arg0: i32) -> (i32, i32) {
    %c0_i32 = arith.constant 0 : i32
    %c0_i32_0 = arith.constant 0 : i32
    %c0_i32_1 = arith.constant 0 : i32
    return %c0_i32, %c0_i32_0 : i32, i32
  }
  func.func @transform_4(%arg0: i32) -> (i32, i32) {
    %c0_i32 = arith.constant 0 : i32
    %c0_i32_0 = arith.constant 0 : i32
    %c0_i32_1 = arith.constant 0 : i32
    return %c0_i32, %c0_i32_0 : i32, i32
  }
  func.func @transform_5(%arg0: i32) -> (i32, i32) {
    %c0_i32 = arith.constant 0 : i32
    %c0_i32_0 = arith.constant 0 : i32
    %c0_i32_1 = arith.constant 0 : i32
    return %c0_i32, %c0_i32_0 : i32, i32
  }
  func.func @transform_6(%arg0: i32) -> (i32, i32) {
    %c0_i32 = arith.constant 0 : i32
    %c0_i32_0 = arith.constant 0 : i32
    %c0_i32_1 = arith.constant 0 : i32
    return %c0_i32, %c0_i32_0 : i32, i32
  }
  func.func @transform_7(%arg0: i32) -> (i32, i32) {
    %c0_i32 = arith.constant 0 : i32
    %c0_i32_0 = arith.constant 0 : i32
    return %arg0, %c0_i32 : i32, i32
  }
}

</mosaic_0001>

<bundles_post_ra>
// kernel: tpu_custom_call.1
= control target key start
LH: loop header
LB: loop body
LE: loop exit
PB: predicated region body
PF: predicated region fallthrough
CT: control target
= control target key end

     0   :  { %12 = vsyncpa [#allocation3], 0  ;;  %s915_s0 = inlined_call_operand.hbm [shape: f32[8,128], index: 0, kind: input, shape index: {}]   ;;  %s916_s1 = inlined_call_operand.hbm [shape: bf16[128,128], index: 1, kind: input, shape index: {}]   ;;  %s917_s2 = inlined_call_operand.hbm [shape: bf16[128,128], index: 2, kind: input, shape index: {}]   ;;  %s918_s3 = inlined_call_operand.hbm [shape: bf16[128,128], index: 3, kind: input, shape index: {}]   ;;  %s919_s4 = inlined_call_operand.hbm [shape: f32[8,128], index: 4, kind: input, shape index: {}]   ;;  %s920_s5 = inlined_call_operand.hbm [shape: f32[8,128], index: 5, kind: input, shape index: {}]   ;;  %s921_s6 = inlined_call_operand.hbm [shape: f32[8,128], index: 6, kind: input, shape index: {}]   ;;  %s922_s7 = inlined_call_operand.hbm [shape: f32[8,128], index: 7, kind: output, shape index: {}]  }
   0x1   :  { %13 = vsyncpa [#allocation6], 0 }
   0x2   :  { %14 = vsyncpa [#allocation9], 0 }
   0x3   :  { %15 = vsyncpa [#allocation12], 0  ;;  %s32_s26 = sshll.u32 %s916_s1, 4  ;;  %s33_s26 = int_to_ptr.hbm [resolvable:$true] %s32_s26 }
   0x4   :  { %16 = vsyncpa [#allocation4], 0  ;;  %s824_s27 = smov [#allocation5]   ;;  %s58_s8 = sshll.u32 %s918_s3, 4  ;;  %s59_s8 = int_to_ptr.hbm [resolvable:$true] %s58_s8 }
   0x5   :  { %s34_s28 = sshll.u32 %s824_s27, 4  ;;  %s825_s9 = smov 64   ;;  %s35_s28 = int_to_ptr.vmem [resolvable:$true] %s34_s28 }
   0x6   :  { %s826_s10 = smov 4   ;;  %s827_s11 = smov [#allocation8]  }
   0x7   :  { %40 = dma.hbm_to_vmem [thread:$0]  %s33_s26, 1024, %s35_s28, [#allocation6], %s825_s9, %s825_s9, %s826_s10  }
   0x8   :  { %s60_s12 = sshll.u32 %s827_s11, 4  ;;  %s83_s14 = sshll.u32 %s920_s5, 4  ;;  %s61_s12 = int_to_ptr.vmem [resolvable:$true] %s60_s12  ;;  %s84_s14 = int_to_ptr.hbm [resolvable:$true] %s83_s14 }
   0x9   :  { %66 = dma.hbm_to_vmem [thread:$0]  %s59_s8, 1024, %s61_s12, [#allocation9], %s825_s9, %s825_s9, %s826_s10  }
   0xa   :  { %s22_s16 = sshll.u32 %s915_s0, 4  ;;  %s828_s17 = smov [#allocation11]   ;;  %s23_s16 = int_to_ptr.hbm [resolvable:$true] %s22_s16 }
   0xb   :  { %s85_s18 = sshll.u32 %s828_s17, 4  ;;  %s829_s19 = smov [#allocation2]   ;;  %s86_s18 = int_to_ptr.vmem [resolvable:$true] %s85_s18 }
   0xc   :  { %88 = dma.hbm_to_vmem [thread:$0]  %s84_s14, 128, %s86_s18, [#allocation12]  }
   0xd   :  { %s24_s20 = sshll.u32 %s829_s19, 4  ;;  %s45_s5 = sshll.u32 %s917_s2, 4  ;;  %s25_s20 = int_to_ptr.vmem [resolvable:$true] %s24_s20  ;;  %s46_s5 = int_to_ptr.hbm [resolvable:$true] %s45_s5 }
   0xe   :  { %27 = dma.hbm_to_vmem [thread:$0]  %s23_s16, 128, %s25_s20, [#allocation3]  }
   0xf   :  { %s72_s25 = sshll.u32 %s919_s4, 4  ;;  %s830_s26 = smov [#allocation7]   ;;  %s73_s25 = int_to_ptr.hbm [resolvable:$true] %s72_s25 }
  0x10   :  { %s47_s0 = sshll.u32 %s830_s26, 4  ;;  %s831_s27 = smov [#allocation10]   ;;  %s48_s0 = int_to_ptr.vmem [resolvable:$true] %s47_s0 }
  0x11   :  { %53 = dma.hbm_to_vmem [thread:$0]  %s46_s5, 1024, %s48_s0, [#allocation6], %s825_s9, %s825_s9, %s826_s10  }
  0x12   :  { %s74_s28 = sshll.u32 %s831_s27, 4  ;;  %s94_s2 = sshll.u32 %s921_s6, 4  ;;  %s75_s28 = int_to_ptr.vmem [resolvable:$true] %s74_s28  ;;  %s95_s2 = int_to_ptr.hbm [resolvable:$true] %s94_s2 }
  0x13   :  { %77 = dma.hbm_to_vmem [thread:$0]  %s73_s25, 128, %s75_s28, [#allocation9]  }
  0x14   :  { %s832_s8 = smov [#allocation13]  }
  0x15   :  { %s96_s11 = sshll.u32 %s832_s8, 4  ;;  %s97_s11 = int_to_ptr.vmem [resolvable:$true] %s96_s11 }
  0x16   :  { %99 = dma.hbm_to_vmem [thread:$0]  %s95_s2, 128, %s97_s11, [#allocation12]  }
  0x17   :  { %814 = dma.done.wait [#allocation3], 128  }
  0x18   :  { %815 = vsyncadd [#allocation3], 4294967168 }
  0x19   :  { %816 = dma.done.wait [#allocation6], 2048  }
  0x1a   :  { %817 = vsyncadd [#allocation6], 4294965248 }
  0x1b   :  { %818 = dma.done.wait [#allocation9], 1152  }
  0x1c   :  { %819 = vsyncadd [#allocation9], 4294966144 }
  0x1d   :  { %820 = dma.done.wait [#allocation12], 256  }
  0x1e   :  { %821 = vsyncadd [#allocation12], 4294967040  ;;  %v580_v0 = vld [vmem:[#allocation5 + $0x38] sm:$0xff]  ;;  %v579_v1 = vld [vmem:[#allocation5 + $0x30] sm:$0xff]  ;;  %v212_v14 = vlaneseq  ;;  %s833_s4 = smov [#allocation14]   ;;  %s464_s12 = sshll.u32 %s922_s7, 4  ;;  %s465_s12 = int_to_ptr.hbm [resolvable:$true] %s464_s12 }
  0x1f   :  { %196 = vmatpush.bf16.msra.mxu0 %v580_v0  ;;  %v578_v2 = vld [vmem:[#allocation5 + $0x28] sm:$0xff]  ;;  %v577_v3 = vld [vmem:[#allocation5 + $0x20] sm:$0xff]  ;;  %v576_v4 = vld [vmem:[#allocation5 + $0x18] sm:$0xff]  ;;  %s462_s6 = sshll.u32 %s833_s4, 4  ;;  %s463_s6 = int_to_ptr.vmem [resolvable:$true] %s462_s6 }
  0x20   :  { %v575_v5 = vld [vmem:[#allocation5 + $0x10] sm:$0xff]  ;;  %v574_v6 = vld [vmem:[#allocation5 + $0x8] sm:$0xff]  ;;  %v573_v7 = vld [vmem:[#allocation5] sm:$0xff]  ;;  %v904_v15 = vand.u32 127, %v212_v14 }
  0x21   :  { %v128_v8 = vld [vmem:[#allocation2] sm:$0xff]  ;;  %v607_v10 = vld [vmem:[#allocation10] ss:$0 sm:$0xff]  ;;  %v587_v22 = vld [vmem:[#allocation7 + $0x30] sm:$0xff] }
  0x22   :  { %v129_v9 = vpack.c.bf16 %v128_v8, %v128_v8  ;;  %vm214_vm0 = vcmp.lt.s32.totalorder %v904_v15, 32  ;;  %v588_v21 = vld [vmem:[#allocation7 + $0x38] sm:$0xff]  ;;  %v586_v23 = vld [vmem:[#allocation7 + $0x28] sm:$0xff]  ;;  %v585_v24 = vld [vmem:[#allocation7 + $0x20] sm:$0xff]  ;;  %vm431_vm7 = vcmp.lt.s32.totalorder %v904_v15, 8 }
  0x23   :  { %197 = vmatpush.bf16.msra.mxu0 %v579_v1  ;;  %307 = vmatpush.bf16.msra.mxu1 %v588_v21  ;;  %v584_v25 = vld [vmem:[#allocation7 + $0x18] sm:$0xff]  ;;  %v583_v26 = vld [vmem:[#allocation7 + $0x10] sm:$0xff]  ;;  %v582_v27 = vld [vmem:[#allocation7 + $0x8] sm:$0xff] }
  0x24   :  { %v581_v28 = vld [vmem:[#allocation7] sm:$0xff]  ;;  %v610_v46 = vld [vmem:[#allocation11] ss:$0 sm:$0xff]  ;;  %v596_v55 = vld [vmem:[#allocation8 + $0x38] sm:$0xff] }
  0x25   :  { %v608_v38 = vld [vmem:[#allocation10 + $0x1] ss:$0 sm:$0xff]  ;;  %v609_v41 = vld [vmem:[#allocation10 + $0x2] ss:$0 sm:$0xff]  ;;  %415 = vmatpush.bf16.msra.mxu2 %v596_v55  ;;  %v595_v56 = vld [vmem:[#allocation8 + $0x30] sm:$0xff] }
  0x26   :  { %v594_v57 = vld [vmem:[#allocation8 + $0x28] sm:$0xff]  ;;  %v593_v58 = vld [vmem:[#allocation8 + $0x20] sm:$0xff]  ;;  %v592_v59 = vld [vmem:[#allocation8 + $0x18] sm:$0xff] }
  0x27   :  { %198 = vmatpush.bf16.msra.mxu0 %v578_v2  ;;  %308 = vmatpush.bf16.msra.mxu1 %v587_v22  ;;  %v591_v60 = vld [vmem:[#allocation8 + $0x10] sm:$0xff]  ;;  %v590_v61 = vld [vmem:[#allocation8 + $0x8] sm:$0xff]  ;;  %v589_v62 = vld [vmem:[#allocation8] sm:$0xff] }
  0x28   :  { %v611_v8 = vld [vmem:[#allocation11 + $0x1] ss:$0 sm:$0xff] }
  0x29   :  { %416 = vmatpush.bf16.msra.mxu2 %v595_v56 }
  0x2b   :  { %199 = vmatpush.bf16.msra.mxu0 %v577_v3  ;;  %309 = vmatpush.bf16.msra.mxu1 %v586_v23 }
  0x2d   :  { %417 = vmatpush.bf16.msra.mxu2 %v594_v57 }
  0x2f   :  { %200 = vmatpush.bf16.msra.mxu0 %v576_v4  ;;  %310 = vmatpush.bf16.msra.mxu1 %v585_v24 }
  0x31   :  { %418 = vmatpush.bf16.msra.mxu2 %v593_v58 }
  0x33   :  { %201 = vmatpush.bf16.msra.mxu0 %v575_v5  ;;  %311 = vmatpush.bf16.msra.mxu1 %v584_v25 }
  0x35   :  { %419 = vmatpush.bf16.msra.mxu2 %v592_v59 }
  0x37   :  { %202 = vmatpush.bf16.msra.mxu0 %v574_v6  ;;  %312 = vmatpush.bf16.msra.mxu1 %v583_v26 }
  0x39   :  { %420 = vmatpush.bf16.msra.mxu2 %v591_v60 }
  0x3b   :  { %203 = vmatpush.bf16.msra.mxu0 %v573_v7  ;;  %313 = vmatpush.bf16.msra.mxu1 %v582_v27 }
  0x3d   :  { %421 = vmatpush.bf16.msra.mxu2 %v590_v61 }
  0x3e   :  { %204 = vmatmul.bf16.vlgmr.msra.gmra.mxu0 %v129_v9 }
  0x3f   :  { %314 = vmatpush.bf16.msra.mxu1 %v581_v28 }
  0x41   :  { %422 = vmatpush.bf16.msra.mxu2 %v589_v62 }
  0xbb   :  { %v205_v11 = vpop.f32.mrf.mxu0 }
  0xbc   :  { %v206_v12 = vadd.f32 %v607_v10, %v205_v11  ;;  %v612_v11 = vld [vmem:[#allocation11 + $0x2] ss:$0 sm:$0xff] }
  0xbe   :  { %209 = vadd.xlane.f32.xlu0 %v206_v12 }
  0xc3   :  { %v207_v13 = vpop.f32.mrf.mxu0 }
 0x131   :  { %v210_v16 = vpop.xlane.xlu0 %209 }
 0x132   :  { %v211_v17 = vmul.f32 0.03125, %v210_v16 }
 0x134   :  { %v215_v18 = vsub.f32 %v206_v12, %v211_v17  ;;  %v613_v17 = vld [vmem:[#allocation13] ss:$0 sm:$0xff] }
 0x136   :  { %v216_v19 = vsel %vm214_vm0, %v215_v18, 0.0 }
 0x137   :  { %v217_v20 = vmul.f32 %v216_v19, %v216_v19 }
 0x139   :  { %218 = vadd.xlane.f32.xlu0 %v217_v20 }
 0x1ac   :  { %v219_v29 = vpop.xlane.xlu0 %218 }
 0x1ad   :  { %v220_v30 = vmul.f32 0.03125, %v219_v29 }
 0x1af   :  { %v221_v31 = vadd.f32 1e-05, %v220_v30 }
 0x1b1   :  { %616 = vrsqrt.f32 %v221_v31  ;;  %vm228_vm2 = vweird.f32 %v221_v31 }
 0x1b7   :  { %v617_v32 = vpop.eup %616 }
 0x1b8   :  { %v223_v33 = vmul.f32 %v617_v32, %v221_v31  ;;  %vm229_vm1 = vweird.f32 %v617_v32 }
 0x1b9   :  { %vm230_vm3 = vmor %vm228_vm2, %vm229_vm1 }
 0x1ba   :  { %v224_v34 = vmul.f32 %v617_v32, %v223_v33 }
 0x1bc   :  { %v225_v35 = vmul.f32 0.5, %v224_v34 }
 0x1be   :  { %v226_v36 = vsub.f32 1.5, %v225_v35  ;;  %v614_v35 = vld [vmem:[#allocation13 + $0x1] ss:$0 sm:$0xff] }
 0x1c0   :  { %v227_v37 = vmul.f32 %v617_v32, %v226_v36 }
 0x1c2   :  { %v231_v39 = vsel %vm230_vm3, %v617_v32, %v227_v37  ;;  %v615_v37 = vld [vmem:[#allocation13 + $0x2] ss:$0 sm:$0xff] }
 0x1c3   :  { %v232_v40 = vmul.f32 %v231_v39, %v216_v19 }
 0x1c5   :  { %v235_v42 = vmul.f32 %v608_v38, %v232_v40 }
 0x1c7   :  { %v238_v43 = vadd.f32 %v609_v41, %v235_v42 }
 0x1c9   :  { %v239_v44 = vmax.f32 %v238_v43, 0.0 }
 0x1cb   :  { %v240_v45 = vpack.c.bf16 %v239_v44, %v239_v44 }
 0x1cd   :  { %315 = vmatmul.bf16.vlgmr.msra.gmra.mxu1 %v240_v45 }
 0x24a   :  { %v316_v47 = vpop.f32.mrf.mxu1 }
 0x24b   :  { %v317_v48 = vadd.f32 %v610_v46, %v316_v47 }
 0x24d   :  { %320 = vadd.xlane.f32.xlu1 %v317_v48 }
 0x252   :  { %v318_v49 = vpop.f32.mrf.mxu1 }
 0x2c0   :  { %v321_v50 = vpop.xlane.xlu1 %320 }
 0x2c1   :  { %v322_v51 = vmul.f32 0.03125, %v321_v50 }
 0x2c3   :  { %v323_v52 = vsub.f32 %v317_v48, %v322_v51 }
 0x2c5   :  { %v324_v53 = vsel %vm214_vm0, %v323_v52, 0.0 }
 0x2c6   :  { %v325_v54 = vmul.f32 %v324_v53, %v324_v53 }
 0x2c8   :  { %326 = vadd.xlane.f32.xlu1 %v325_v54 }
 0x33b   :  { %v327_v63 = vpop.xlane.xlu1 %326 }
 0x33c   :  { %v328_v0 = vmul.f32 0.03125, %v327_v63 }
 0x33e   :  { %v329_v1 = vadd.f32 1e-05, %v328_v0 }
 0x340   :  { %618 = vrsqrt.f32 %v329_v1  ;;  %vm336_vm5 = vweird.f32 %v329_v1 }
 0x346   :  { %v619_v2 = vpop.eup %618 }
 0x347   :  { %v331_v3 = vmul.f32 %v619_v2, %v329_v1  ;;  %vm337_vm4 = vweird.f32 %v619_v2 }
 0x348   :  { %vm338_vm6 = vmor %vm336_vm5, %vm337_vm4 }
 0x349   :  { %v332_v4 = vmul.f32 %v619_v2, %v331_v3 }
 0x34b   :  { %v333_v5 = vmul.f32 0.5, %v332_v4 }
 0x34d   :  { %v334_v6 = vsub.f32 1.5, %v333_v5 }
 0x34f   :  { %v335_v7 = vmul.f32 %v619_v2, %v334_v6 }
 0x351   :  { %v339_v9 = vsel %vm338_vm6, %v619_v2, %v335_v7 }
 0x352   :  { %v340_v10 = vmul.f32 %v339_v9, %v324_v53 }
 0x354   :  { %v343_v12 = vmul.f32 %v611_v8, %v340_v10 }
 0x356   :  { %v346_v13 = vadd.f32 %v612_v11, %v343_v12 }
 0x358   :  { %v347_v14 = vmax.f32 %v346_v13, 0.0 }
 0x35a   :  { %v348_v16 = vpack.c.bf16 %v347_v14, %v347_v14 }
 0x35c   :  { %423 = vmatmul.bf16.vlgmr.msra.gmra.mxu2 %v348_v16 }
 0x3df   :  { %v424_v18 = vpop.f32.mrf.mxu2 }
 0x3e0   :  { %v425_v19 = vadd.f32 %v613_v17, %v424_v18 }
 0x3e2   :  { %428 = vadd.xlane.f32.xlu2 %v425_v19 }
 0x3e7   :  { %v426_v20 = vpop.f32.mrf.mxu2 }
 0x455   :  { %v429_v21 = vpop.xlane.xlu2 %428 }
 0x456   :  { %v430_v22 = vmul.f32 0.125, %v429_v21 }
 0x458   :  { %v432_v23 = vsub.f32 %v425_v19, %v430_v22 }
 0x45a   :  { %v433_v24 = vsel %vm431_vm7, %v432_v23, 0.0 }
 0x45b   :  { %v434_v25 = vmul.f32 %v433_v24, %v433_v24 }
 0x45d   :  { %435 = vadd.xlane.f32.xlu2 %v434_v25 }
 0x4d0   :  { %v436_v26 = vpop.xlane.xlu2 %435 }
 0x4d1   :  { %v437_v27 = vmul.f32 0.125, %v436_v26 }
 0x4d3   :  { %v438_v28 = vadd.f32 1e-05, %v437_v27 }
 0x4d5   :  { %620 = vrsqrt.f32 %v438_v28  ;;  %vm445_vm9 = vweird.f32 %v438_v28 }
 0x4db   :  { %v621_v29 = vpop.eup %620 }
 0x4dc   :  { %v440_v30 = vmul.f32 %v621_v29, %v438_v28  ;;  %vm446_vm8 = vweird.f32 %v621_v29 }
 0x4dd   :  { %vm447_vm10 = vmor %vm445_vm9, %vm446_vm8 }
 0x4de   :  { %v441_v31 = vmul.f32 %v621_v29, %v440_v30 }
 0x4e0   :  { %v442_v32 = vmul.f32 0.5, %v441_v31 }
 0x4e2   :  { %v443_v33 = vsub.f32 1.5, %v442_v32 }
 0x4e4   :  { %v444_v34 = vmul.f32 %v621_v29, %v443_v33 }
 0x4e6   :  { %v448_v36 = vsel %vm447_vm10, %v621_v29, %v444_v34 }
 0x4e7   :  { %v449_v15 = vmul.f32 %v448_v36, %v433_v24 }
 0x4e9   :  { %v452_v38 = vmul.f32 %v614_v35, %v449_v15 }
 0x4eb   :  { %v455_v39 = vadd.f32 %v615_v37, %v452_v38 }
 0x4ed   :  { %456 = vst [vmem:[#allocation14] sm:$0xff] %v455_v39 }
 0x4ee   :  { %467 = dma.vmem_to_hbm [thread:$0]  %s463_s6, 128, %s465_s12, [#allocation4]  }
 0x4ef   :  { %822 = dma.done.wait [#allocation4], 128  }
 0x4f0   :  { %823 = vsyncadd [#allocation4], 4294967168 }
 0x4f1   :  { %472 = vsyncpa [#allocation3], 1 }
 0x4f2   :  { %473 = vsyncpa [#allocation6], 1 }
 0x4f3   :  { %474 = vsyncpa [#allocation9], 1 }
 0x4f4   :  { %475 = vsyncpa [#allocation12], 1 }
 0x4f5   :  { %476 = vsyncpa [#allocation4], 1 }

// kernel: tpu_custom_call.1
= control target key start
LH: loop header
LB: loop body
LE: loop exit
PB: predicated region body
PF: predicated region fallthrough
CT: control target
= control target key end

     0   :  { %12 = vsyncpa [#allocation3], 0  ;;  %s915_s0 = inlined_call_operand.hbm [shape: f32[8,128], index: 0, kind: input, shape index: {}]   ;;  %s916_s1 = inlined_call_operand.hbm [shape: bf16[128,128], index: 1, kind: input, shape index: {}]   ;;  %s917_s2 = inlined_call_operand.hbm [shape: bf16[128,128], index: 2, kind: input, shape index: {}]   ;;  %s918_s3 = inlined_call_operand.hbm [shape: bf16[128,128], index: 3, kind: input, shape index: {}]   ;;  %s919_s4 = inlined_call_operand.hbm [shape: f32[8,128], index: 4, kind: input, shape index: {}]   ;;  %s920_s5 = inlined_call_operand.hbm [shape: f32[8,128], index: 5, kind: input, shape index: {}]   ;;  %s921_s6 = inlined_call_operand.hbm [shape: f32[8,128], index: 6, kind: input, shape index: {}]   ;;  %s922_s7 = inlined_call_operand.hbm [shape: f32[8,128], index: 7, kind: output, shape index: {}]  }
   0x1   :  { %13 = vsyncpa [#allocation6], 0 }
   0x2   :  { %14 = vsyncpa [#allocation9], 0 }
   0x3   :  { %15 = vsyncpa [#allocation12], 0  ;;  %s32_s26 = sshll.u32 %s916_s1, 4  ;;  %s33_s26 = int_to_ptr.hbm [resolvable:$true] %s32_s26 }
   0x4   :  { %16 = vsyncpa [#allocation4], 0  ;;  %s824_s27 = smov [#allocation5]   ;;  %s58_s8 = sshll.u32 %s918_s3, 4  ;;  %s59_s8 = int_to_ptr.hbm [resolvable:$true] %s58_s8 }
   0x5   :  { %s34_s28 = sshll.u32 %s824_s27, 4  ;;  %s825_s9 = smov 64   ;;  %s35_s28 = int_to_ptr.vmem [resolvable:$true] %s34_s28 }
   0x6   :  { %s826_s10 = smov 4   ;;  %s827_s11 = smov [#allocation8]  }
   0x7   :  { %40 = dma.hbm_to_vmem [thread:$0]  %s33_s26, 1024, %s35_s28, [#allocation6], %s825_s9, %s825_s9, %s826_s10  }
   0x8   :  { %s60_s12 = sshll.u32 %s827_s11, 4  ;;  %s83_s14 = sshll.u32 %s920_s5, 4  ;;  %s61_s12 = int_to_ptr.vmem [resolvable:$true] %s60_s12  ;;  %s84_s14 = int_to_ptr.hbm [resolvable:$true] %s83_s14 }
   0x9   :  { %66 = dma.hbm_to_vmem [thread:$0]  %s59_s8, 1024, %s61_s12, [#allocation9], %s825_s9, %s825_s9, %s826_s10  }
   0xa   :  { %s22_s16 = sshll.u32 %s915_s0, 4  ;;  %s828_s17 = smov [#allocation11]   ;;  %s23_s16 = int_to_ptr.hbm [resolvable:$true] %s22_s16 }
   0xb   :  { %s85_s18 = sshll.u32 %s828_s17, 4  ;;  %s829_s19 = smov [#allocation2]   ;;  %s86_s18 = int_to_ptr.vmem [resolvable:$true] %s85_s18 }
   0xc   :  { %88 = dma.hbm_to_vmem [thread:$0]  %s84_s14, 128, %s86_s18, [#allocation12]  }
   0xd   :  { %s24_s20 = sshll.u32 %s829_s19, 4  ;;  %s45_s5 = sshll.u32 %s917_s2, 4  ;;  %s25_s20 = int_to_ptr.vmem [resolvable:$true] %s24_s20  ;;  %s46_s5 = int_to_ptr.hbm [resolvable:$true] %s45_s5 }
   0xe   :  { %27 = dma.hbm_to_vmem [thread:$0]  %s23_s16, 128, %s25_s20, [#allocation3]  }
   0xf   :  { %s72_s25 = sshll.u32 %s919_s4, 4  ;;  %s830_s26 = smov [#allocation7]   ;;  %s73_s25 = int_to_ptr.hbm [resolvable:$true] %s72_s25 }
  0x10   :  { %s47_s0 = sshll.u32 %s830_s26, 4  ;;  %s831_s27 = smov [#allocation10]   ;;  %s48_s0 = int_to_ptr.vmem [resolvable:$true] %s47_s0 }
  0x11   :  { %53 = dma.hbm_to_vmem [thread:$0]  %s46_s5, 1024, %s48_s0, [#allocation6], %s825_s9, %s825_s9, %s826_s10  }
  0x12   :  { %s74_s28 = sshll.u32 %s831_s27, 4  ;;  %s94_s2 = sshll.u32 %s921_s6, 4  ;;  %s75_s28 = int_to_ptr.vmem [resolvable:$true] %s74_s28  ;;  %s95_s2 = int_to_ptr.hbm [resolvable:$true] %s94_s2 }
  0x13   :  { %77 = dma.hbm_to_vmem [thread:$0]  %s73_s25, 128, %s75_s28, [#allocation9]  }
  0x14   :  { %s832_s8 = smov [#allocation13]  }
  0x15   :  { %s96_s11 = sshll.u32 %s832_s8, 4  ;;  %s97_s11 = int_to_ptr.vmem [resolvable:$true] %s96_s11 }
  0x16   :  { %99 = dma.hbm_to_vmem [thread:$0]  %s95_s2, 128, %s97_s11, [#allocation12]  }
  0x17   :  { %814 = dma.done.wait [#allocation3], 128  }
  0x18   :  { %815 = vsyncadd [#allocation3], 4294967168 }
  0x19   :  { %816 = dma.done.wait [#allocation6], 2048  }
  0x1a   :  { %817 = vsyncadd [#allocation6], 4294965248 }
  0x1b   :  { %818 = dma.done.wait [#allocation9], 1152  }
  0x1c   :  { %819 = vsyncadd [#allocation9], 4294966144 }
  0x1d   :  { %820 = dma.done.wait [#allocation12], 256  }
  0x1e   :  { %821 = vsyncadd [#allocation12], 4294967040  ;;  %v580_v0 = vld [vmem:[#allocation5 + $0x38] sm:$0xff]  ;;  %v579_v1 = vld [vmem:[#allocation5 + $0x30] sm:$0xff]  ;;  %v212_v14 = vlaneseq  ;;  %s833_s4 = smov [#allocation14]   ;;  %s464_s12 = sshll.u32 %s922_s7, 4  ;;  %s465_s12 = int_to_ptr.hbm [resolvable:$true] %s464_s12 }
  0x1f   :  { %196 = vmatpush.bf16.msra.mxu0 %v580_v0  ;;  %v578_v2 = vld [vmem:[#allocation5 + $0x28] sm:$0xff]  ;;  %v577_v3 = vld [vmem:[#allocation5 + $0x20] sm:$0xff]  ;;  %v576_v4 = vld [vmem:[#allocation5 + $0x18] sm:$0xff]  ;;  %s462_s6 = sshll.u32 %s833_s4, 4  ;;  %s463_s6 = int_to_ptr.vmem [resolvable:$true] %s462_s6 }
  0x20   :  { %v575_v5 = vld [vmem:[#allocation5 + $0x10] sm:$0xff]  ;;  %v574_v6 = vld [vmem:[#allocation5 + $0x8] sm:$0xff]  ;;  %v573_v7 = vld [vmem:[#allocation5] sm:$0xff]  ;;  %v904_v15 = vand.u32 127, %v212_v14 }
  0x21   :  { %v128_v8 = vld [vmem:[#allocation2] sm:$0xff]  ;;  %v607_v10 = vld [vmem:[#allocation10] ss:$0 sm:$0xff]  ;;  %v587_v22 = vld [vmem:[#allocation7 + $0x30] sm:$0xff] }
  0x22   :  { %v129_v9 = vpack.c.bf16 %v128_v8, %v128_v8  ;;  %vm214_vm0 = vcmp.lt.s32.totalorder %v904_v15, 32  ;;  %v588_v21 = vld [vmem:[#allocation7 + $0x38] sm:$0xff]  ;;  %v586_v23 = vld [vmem:[#allocation7 + $0x28] sm:$0xff]  ;;  %v585_v24 = vld [vmem:[#allocation7 + $0x20] sm:$0xff]  ;;  %vm431_vm7 = vcmp.lt.s32.totalorder %v904_v15, 8 }
  0x23   :  { %197 = vmatpush.bf16.msra.mxu0 %v579_v1  ;;  %307 = vmatpush.bf16.msra.mxu1 %v588_v21  ;;  %v584_v25 = vld [vmem:[#allocation7 + $0x18] sm:$0xff]  ;;  %v583_v26 = vld [vmem:[#allocation7 + $0x10] sm:$0xff]  ;;  %v582_v27 = vld [vmem:[#allocation7 + $0x8] sm:$0xff] }
  0x24   :  { %v581_v28 = vld [vmem:[#allocation7] sm:$0xff]  ;;  %v610_v46 = vld [vmem:[#allocation11] ss:$0 sm:$0xff]  ;;  %v596_v55 = vld [vmem:[#allocation8 + $0x38] sm:$0xff] }
  0x25   :  { %v608_v38 = vld [vmem:[#allocation10 + $0x1] ss:$0 sm:$0xff]  ;;  %v609_v41 = vld [vmem:[#allocation10 + $0x2] ss:$0 sm:$0xff]  ;;  %415 = vmatpush.bf16.msra.mxu2 %v596_v55  ;;  %v595_v56 = vld [vmem:[#allocation8 + $0x30] sm:$0xff] }
  0x26   :  { %v594_v57 = vld [vmem:[#allocation8 + $0x28] sm:$0xff]  ;;  %v593_v58 = vld [vmem:[#allocation8 + $0x20] sm:$0xff]  ;;  %v592_v59 = vld [vmem:[#allocation8 + $0x18] sm:$0xff] }
  0x27   :  { %198 = vmatpush.bf16.msra.mxu0 %v578_v2  ;;  %308 = vmatpush.bf16.msra.mxu1 %v587_v22  ;;  %v591_v60 = vld [vmem:[#allocation8 + $0x10] sm:$0xff]  ;;  %v590_v61 = vld [vmem:[#allocation8 + $0x8] sm:$0xff]  ;;  %v589_v62 = vld [vmem:[#allocation8] sm:$0xff] }
  0x28   :  { %v611_v8 = vld [vmem:[#allocation11 + $0x1] ss:$0 sm:$0xff] }
  0x29   :  { %416 = vmatpush.bf16.msra.mxu2 %v595_v56 }
  0x2b   :  { %199 = vmatpush.bf16.msra.mxu0 %v577_v3  ;;  %309 = vmatpush.bf16.msra.mxu1 %v586_v23 }
  0x2d   :  { %417 = vmatpush.bf16.msra.mxu2 %v594_v57 }
  0x2f   :  { %200 = vmatpush.bf16.msra.mxu0 %v576_v4  ;;  %310 = vmatpush.bf16.msra.mxu1 %v585_v24 }
  0x31   :  { %418 = vmatpush.bf16.msra.mxu2 %v593_v58 }
  0x33   :  { %201 = vmatpush.bf16.msra.mxu0 %v575_v5  ;;  %311 = vmatpush.bf16.msra.mxu1 %v584_v25 }
  0x35   :  { %419 = vmatpush.bf16.msra.mxu2 %v592_v59 }
  0x37   :  { %202 = vmatpush.bf16.msra.mxu0 %v574_v6  ;;  %312 = vmatpush.bf16.msra.mxu1 %v583_v26 }
  0x39   :  { %420 = vmatpush.bf16.msra.mxu2 %v591_v60 }
  0x3b   :  { %203 = vmatpush.bf16.msra.mxu0 %v573_v7  ;;  %313 = vmatpush.bf16.msra.mxu1 %v582_v27 }
  0x3d   :  { %421 = vmatpush.bf16.msra.mxu2 %v590_v61 }
  0x3e   :  { %204 = vmatmul.bf16.vlgmr.msra.gmra.mxu0 %v129_v9 }
  0x3f   :  { %314 = vmatpush.bf16.msra.mxu1 %v581_v28 }
  0x41   :  { %422 = vmatpush.bf16.msra.mxu2 %v589_v62 }
  0xbb   :  { %v205_v11 = vpop.f32.mrf.mxu0 }
  0xbc   :  { %v206_v12 = vadd.f32 %v607_v10, %v205_v11  ;;  %v612_v11 = vld [vmem:[#allocation11 + $0x2] ss:$0 sm:$0xff] }
  0xbe   :  { %209 = vadd.xlane.f32.xlu0 %v206_v12 }
  0xc3   :  { %v207_v13 = vpop.f32.mrf.mxu0 }
 0x131   :  { %v210_v16 = vpop.xlane.xlu0 %209 }
 0x132   :  { %v211_v17 = vmul.f32 0.03125, %v210_v16 }
 0x134   :  { %v215_v18 = vsub.f32 %v206_v12, %v211_v17  ;;  %v613_v17 = vld [vmem:[#allocation13] ss:$0 sm:$0xff] }
 0x136   :  { %v216_v19 = vsel %vm214_vm0, %v215_v18, 0.0 }
 0x137   :  { %v217_v20 = vmul.f32 %v216_v19, %v216_v19 }
 0x139   :  { %218 = vadd.xlane.f32.xlu0 %v217_v20 }
 0x1ac   :  { %v219_v29 = vpop.xlane.xlu0 %218 }
 0x1ad   :  { %v220_v30 = vmul.f32 0.03125, %v219_v29 }
 0x1af   :  { %v221_v31 = vadd.f32 1e-05, %v220_v30 }
 0x1b1   :  { %616 = vrsqrt.f32 %v221_v31  ;;  %vm228_vm2 = vweird.f32 %v221_v31 }
 0x1b7   :  { %v617_v32 = vpop.eup %616 }
 0x1b8   :  { %v223_v33 = vmul.f32 %v617_v32, %v221_v31  ;;  %vm229_vm1 = vweird.f32 %v617_v32 }
 0x1b9   :  { %vm230_vm3 = vmor %vm228_vm2, %vm229_vm1 }
 0x1ba   :  { %v224_v34 = vmul.f32 %v617_v32, %v223_v33 }
 0x1bc   :  { %v225_v35 = vmul.f32 0.5, %v224_v34 }
 0x1be   :  { %v226_v36 = vsub.f32 1.5, %v225_v35  ;;  %v614_v35 = vld [vmem:[#allocation13 + $0x1] ss:$0 sm:$0xff] }
 0x1c0   :  { %v227_v37 = vmul.f32 %v617_v32, %v226_v36 }
 0x1c2   :  { %v231_v39 = vsel %vm230_vm3, %v617_v32, %v227_v37  ;;  %v615_v37 = vld [vmem:[#allocation13 + $0x2] ss:$0 sm:$0xff] }
 0x1c3   :  { %v232_v40 = vmul.f32 %v231_v39, %v216_v19 }
 0x1c5   :  { %v235_v42 = vmul.f32 %v608_v38, %v232_v40 }
 0x1c7   :  { %v238_v43 = vadd.f32 %v609_v41, %v235_v42 }
 0x1c9   :  { %v239_v44 = vmax.f32 %v238_v43, 0.0 }
 0x1cb   :  { %v240_v45 = vpack.c.bf16 %v239_v44, %v239_v44 }
 0x1cd   :  { %315 = vmatmul.bf16.vlgmr.msra.gmra.mxu1 %v240_v45 }
 0x24a   :  { %v316_v47 = vpop.f32.mrf.mxu1 }
 0x24b   :  { %v317_v48 = vadd.f32 %v610_v46, %v316_v47 }
 0x24d   :  { %320 = vadd.xlane.f32.xlu1 %v317_v48 }
 0x252   :  { %v318_v49 = vpop.f32.mrf.mxu1 }
 0x2c0   :  { %v321_v50 = vpop.xlane.xlu1 %320 }
 0x2c1   :  { %v322_v51 = vmul.f32 0.03125, %v321_v50 }
 0x2c3   :  { %v323_v52 = vsub.f32 %v317_v48, %v322_v51 }
 0x2c5   :  { %v324_v53 = vsel %vm214_vm0, %v323_v52, 0.0 }
 0x2c6   :  { %v325_v54 = vmul.f32 %v324_v53, %v324_v53 }
 0x2c8   :  { %326 = vadd.xlane.f32.xlu1 %v325_v54 }
 0x33b   :  { %v327_v63 = vpop.xlane.xlu1 %326 }
 0x33c   :  { %v328_v0 = vmul.f32 0.03125, %v327_v63 }
 0x33e   :  { %v329_v1 = vadd.f32 1e-05, %v328_v0 }
 0x340   :  { %618 = vrsqrt.f32 %v329_v1  ;;  %vm336_vm5 = vweird.f32 %v329_v1 }
 0x346   :  { %v619_v2 = vpop.eup %618 }
 0x347   :  { %v331_v3 = vmul.f32 %v619_v2, %v329_v1  ;;  %vm337_vm4 = vweird.f32 %v619_v2 }
 0x348   :  { %vm338_vm6 = vmor %vm336_vm5, %vm337_vm4 }
 0x349   :  { %v332_v4 = vmul.f32 %v619_v2, %v331_v3 }
 0x34b   :  { %v333_v5 = vmul.f32 0.5, %v332_v4 }
 0x34d   :  { %v334_v6 = vsub.f32 1.5, %v333_v5 }
 0x34f   :  { %v335_v7 = vmul.f32 %v619_v2, %v334_v6 }
 0x351   :  { %v339_v9 = vsel %vm338_vm6, %v619_v2, %v335_v7 }
 0x352   :  { %v340_v10 = vmul.f32 %v339_v9, %v324_v53 }
 0x354   :  { %v343_v12 = vmul.f32 %v611_v8, %v340_v10 }
 0x356   :  { %v346_v13 = vadd.f32 %v612_v11, %v343_v12 }
 0x358   :  { %v347_v14 = vmax.f32 %v346_v13, 0.0 }
 0x35a   :  { %v348_v16 = vpack.c.bf16 %v347_v14, %v347_v14 }
 0x35c   :  { %423 = vmatmul.bf16.vlgmr.msra.gmra.mxu2 %v348_v16 }
 0x3df   :  { %v424_v18 = vpop.f32.mrf.mxu2 }
 0x3e0   :  { %v425_v19 = vadd.f32 %v613_v17, %v424_v18 }
 0x3e2   :  { %428 = vadd.xlane.f32.xlu2 %v425_v19 }
 0x3e7   :  { %v426_v20 = vpop.f32.mrf.mxu2 }
 0x455   :  { %v429_v21 = vpop.xlane.xlu2 %428 }
 0x456   :  { %v430_v22 = vmul.f32 0.125, %v429_v21 }
 0x458   :  { %v432_v23 = vsub.f32 %v425_v19, %v430_v22 }
 0x45a   :  { %v433_v24 = vsel %vm431_vm7, %v432_v23, 0.0 }
 0x45b   :  { %v434_v25 = vmul.f32 %v433_v24, %v433_v24 }
 0x45d   :  { %435 = vadd.xlane.f32.xlu2 %v434_v25 }
 0x4d0   :  { %v436_v26 = vpop.xlane.xlu2 %435 }
 0x4d1   :  { %v437_v27 = vmul.f32 0.125, %v436_v26 }
 0x4d3   :  { %v438_v28 = vadd.f32 1e-05, %v437_v27 }
 0x4d5   :  { %620 = vrsqrt.f32 %v438_v28  ;;  %vm445_vm9 = vweird.f32 %v438_v28 }
 0x4db   :  { %v621_v29 = vpop.eup %620 }
 0x4dc   :  { %v440_v30 = vmul.f32 %v621_v29, %v438_v28  ;;  %vm446_vm8 = vweird.f32 %v621_v29 }
 0x4dd   :  { %vm447_vm10 = vmor %vm445_vm9, %vm446_vm8 }
 0x4de   :  { %v441_v31 = vmul.f32 %v621_v29, %v440_v30 }
 0x4e0   :  { %v442_v32 = vmul.f32 0.5, %v441_v31 }
 0x4e2   :  { %v443_v33 = vsub.f32 1.5, %v442_v32 }
 0x4e4   :  { %v444_v34 = vmul.f32 %v621_v29, %v443_v33 }
 0x4e6   :  { %v448_v36 = vsel %vm447_vm10, %v621_v29, %v444_v34 }
 0x4e7   :  { %v449_v15 = vmul.f32 %v448_v36, %v433_v24 }
 0x4e9   :  { %v452_v38 = vmul.f32 %v614_v35, %v449_v15 }
 0x4eb   :  { %v455_v39 = vadd.f32 %v615_v37, %v452_v38 }
 0x4ed   :  { %456 = vst [vmem:[#allocation14] sm:$0xff] %v455_v39 }
 0x4ee   :  { %467 = dma.vmem_to_hbm [thread:$0]  %s463_s6, 128, %s465_s12, [#allocation4]  }
 0x4ef   :  { %822 = dma.done.wait [#allocation4], 128  }
 0x4f0   :  { %823 = vsyncadd [#allocation4], 4294967168 }
 0x4f1   :  { %472 = vsyncpa [#allocation3], 1 }
 0x4f2   :  { %473 = vsyncpa [#allocation6], 1 }
 0x4f3   :  { %474 = vsyncpa [#allocation9], 1 }
 0x4f4   :  { %475 = vsyncpa [#allocation12], 1 }
 0x4f5   :  { %476 = vsyncpa [#allocation4], 1 }

</bundles_post_ra>
